<compile_context>
chip_gen: v6e
topology: v6e:2x2x1
jax: 0.10.0
libtpu: 0.0.40
codegen_flags: <defaults>
</compile_context>

<pallas_src>
import jax
import jax.numpy as jnp
from jax.experimental import pallas as pl
from jax.experimental.pallas import tpu as pltpu


def preference_kernel(x_ref, w1_ref, b1_ref, w2_ref, b2_ref, mask_ref, out_ref):
    # x_ref:    (tb*S, F)  offer features for this batch block (bf16 or f32)
    # w1_ref:   (F, H)     linear1.weight.T (same dtype as x)
    # b1_ref:   (1, H)     linear1.bias (f32)
    # w2_ref:   (1, H)     linear2.weight row vector (f32)
    # b2_ref:   (1, 1)     linear2.bias (f32)
    # mask_ref: (tb, S)    f32 binary mask
    # out_ref:  (tb, S)    f32 log choice probabilities
    TB, S = mask_ref.shape
    H = w1_ref.shape[1]

    # ---- linear1 + relu: one 2-D MXU matmul, f32 accumulation --------------
    h = jnp.dot(x_ref[...], w1_ref[...], preferred_element_type=jnp.float32)
    h = jnp.maximum(h + b1_ref[...], 0.0)                        # (tb*S, H) f32

    # ---- linear2 (H -> 1) as VPU multiply + XLU lane reduction (all f32) ----
    # (tb*S, H) -> (tb, S, H): sublane-tile split only (S == 8), free retile.
    h3 = h.reshape(TB, S, H)
    logits = jnp.sum(h3 * w2_ref[...], axis=-1) + b2_ref[...]    # (tb, S) f32

    # ---- mask + log_softmax over the offer-set axis -------------------------
    # Exact '== 1.0' compare matches the PyTorch module's `p_mask == 1`;
    # mask stays f32 (never cast) so the equality is never perturbed.
    masked = jnp.where(mask_ref[...] == 1.0, logits, -jnp.inf)   # (tb, S)
    m = jnp.max(masked, axis=-1, keepdims=True)
    shifted = masked - m
    lse = jnp.log(jnp.sum(jnp.exp(shifted), axis=-1, keepdims=True))
    out_ref[...] = shifted - lse


def _choose_block_batch(B, S, target_rows=1024):
    """Pick a batch block so that the x block has ~target_rows rows.

    Constraints: tb must divide B, and the (tb, S) mask/out block must obey
    the (8, 128) tiling rule -> tb % 8 == 0 unless tb == B (full dim).
    """
    tb_cap = max(1, target_rows // S)
    if B <= tb_cap:
        return B
    for tb in range(tb_cap, 0, -1):
        if B % tb == 0 and tb % 8 == 0:
            return tb
    return B  # fallback: single block along batch


def preference_forward(p_offerset, p_mask, w1_t, b1, w2_row, b2,
                       *, block_batch=None, mxu_dtype=jnp.bfloat16):
    """p_offerset: (B, S, F) f32; p_mask: (B, S) f32 binary.

    w1_t: (F, H) = linear1.weight.T, b1: (1, H), w2_row: (1, H) =
    linear2.weight, b2: (1, 1).  Returns (B, S) f32 log choice probabilities.
    """
    B, S, F = p_offerset.shape
    H = w1_t.shape[1]

    tb = _choose_block_batch(B, S) if block_batch is None else block_batch
    assert B % tb == 0, "block_batch must divide B"
    grid = (B // tb,)

    # Row-major contiguous -> free reshape; lets linear1 be one 2-D matmul.
    x_flat = p_offerset.reshape(B * S, F)
    if mxu_dtype is not None and mxu_dtype != p_offerset.dtype:
        # Halve HBM traffic for the dominant stream (x) and the weight;
        # accumulation stays f32 via preferred_element_type in the kernel.
        x_flat = x_flat.astype(mxu_dtype)
        w1_t = w1_t.astype(mxu_dtype)

    return pl.pallas_call(
        preference_kernel,
        out_shape=jax.ShapeDtypeStruct((B, S), jnp.float32),
        grid=grid,
        in_specs=[
            # Streamed per grid step (double-buffered by Pallas):
            pl.BlockSpec((tb * S, F), lambda i: (i, 0)),   # x rows
            # VMEM-resident across the whole grid:
            pl.BlockSpec((F, H), lambda i: (0, 0)),        # w1
            pl.BlockSpec((1, H), lambda i: (0, 0)),        # b1
            pl.BlockSpec((1, H), lambda i: (0, 0)),        # w2
            pl.BlockSpec((1, 1), lambda i: (0, 0)),        # b2
            # Streamed per grid step:
            pl.BlockSpec((tb, S), lambda i: (i, 0)),       # mask
        ],
        out_specs=pl.BlockSpec((tb, S), lambda i: (i, 0)),
        compiler_params=pltpu.CompilerParams(
            # Batch blocks are independent -> shard across v7x's 2 TCs.
            dimension_semantics=("parallel",),
            # Explicit budget: safe on v5e/v6e (128 MiB) and v7x (64 MiB);
            # blocks here are far below it even with F padding to 128 lanes.
            vmem_limit_bytes=32 * 1024 * 1024,
        ),
    )(x_flat, w1_t, b1, w2_row, b2, p_mask)


def preference_reference(p_offerset, p_mask, w1_t, b1, w2_row, b2):
    h = jnp.maximum(p_offerset @ w1_t + b1, 0.0)
    logits = jnp.einsum("bsh,h->bs", h, w2_row[0]) + b2[0, 0]
    masked = jnp.where(p_mask == 1.0, logits, -jnp.inf)
    return jax.nn.log_softmax(masked, axis=-1)


if __name__ == "__main__":
    # B = batch, S = offer-set size, F = p_num_feature, H = hidden_size
    B, S, F, H = 2, 8, 16, 32

    key = jax.random.PRNGKey(0)
    k_x, k_m, k_w1, k_b1, k_w2, k_b2 = jax.random.split(key, 6)

    p_offerset = jax.random.normal(k_x, (B, S, F), dtype=jnp.float32)
    # binary mask, at least one valid offer per row (module precondition)
    p_mask = (jax.random.uniform(k_m, (B, S)) > 0.3).astype(jnp.float32)
    p_mask = p_mask.at[:, 0].set(1.0)

    # weights ~ N(0,1) as in the module's init; biases nn.Linear-style uniform
    w1_t = jax.random.normal(k_w1, (F, H), dtype=jnp.float32)        # linear1.weight.T
    b1 = jax.random.uniform(k_b1, (1, H), dtype=jnp.float32,
                            minval=-1.0 / jnp.sqrt(F), maxval=1.0 / jnp.sqrt(F))
    w2_row = jax.random.normal(k_w2, (1, H), dtype=jnp.float32)      # linear2.weight
    b2 = jax.random.uniform(k_b2, (1, 1), dtype=jnp.float32,
                            minval=-1.0 / jnp.sqrt(H), maxval=1.0 / jnp.sqrt(H))

    out = jax.block_until_ready(
        preference_forward(p_offerset, p_mask, w1_t, b1, w2_row, b2))

    # Reference on identically bf16-rounded MXU inputs (epilogue stays f32),
    # so the comparison isolates kernel correctness from the intended
    # bandwidth-saving quantization of x / w1.
    x_q = p_offerset.astype(jnp.bfloat16).astype(jnp.float32)
    w1_q = w1_t.astype(jnp.bfloat16).astype(jnp.float32)
    ref = preference_reference(x_q, p_mask, w1_q, b1, w2_row, b2)

    assert out.shape == (B, S)
    assert jnp.allclose(out, ref, atol=1e-4, rtol=1e-4), "mismatch vs reference"

    print("KERNEL_OK")
</pallas_src>

<mosaic_0001>
module attributes {stable_mosaic.version = 11 : i64} {
  func.func @preference_kernel(%arg0: i32, %arg1: memref<16x16xbf16, #tpu.memory_space<vmem>>, %arg2: memref<16x32xbf16, #tpu.memory_space<vmem>>, %arg3: memref<1x32xf32, #tpu.memory_space<vmem>>, %arg4: memref<1x32xf32, #tpu.memory_space<vmem>>, %arg5: memref<1x1xf32, #tpu.memory_space<vmem>>, %arg6: memref<2x8xf32, #tpu.memory_space<vmem>>, %arg7: memref<2x8xf32, #tpu.memory_space<vmem>>) attributes {dimension_semantics = [#tpu.dimension_semantics<parallel>], iteration_bounds = array<i64: 1>, scalar_prefetch = 0 : i64, scratch_operands = 0 : i64, tpu.core_type = #tpu.core_type<tc>, window_params = [{transform_indices = @transform_0, window_bounds = array<i64: 16, 16>}, {pipeline_mode = #tpu.pipeline_mode<synchronous>, transform_indices = @transform_1, window_bounds = array<i64: 16, 32>}, {pipeline_mode = #tpu.pipeline_mode<synchronous>, transform_indices = @transform_2, window_bounds = array<i64: 1, 32>}, {pipeline_mode = #tpu.pipeline_mode<synchronous>, transform_indices = @transform_3, window_bounds = array<i64: 1, 32>}, {pipeline_mode = #tpu.pipeline_mode<synchronous>, transform_indices = @transform_4, window_bounds = array<i64: 1, 1>}, {transform_indices = @transform_5, window_bounds = array<i64: 2, 8>}, {transform_indices = @transform_6, window_bounds = array<i64: 2, 8>}]} {
    %c0 = arith.constant 0 : index
    %c0_0 = arith.constant 0 : index
    %0 = vector.load %arg1[%c0, %c0_0] : memref<16x16xbf16, #tpu.memory_space<vmem>>, vector<16x16xbf16>
    %c0_1 = arith.constant 0 : index
    %c0_2 = arith.constant 0 : index
    %1 = vector.load %arg2[%c0_1, %c0_2] : memref<16x32xbf16, #tpu.memory_space<vmem>>, vector<16x32xbf16>
    %cst = arith.constant dense<0.000000e+00> : vector<16x32xf32>
    %2 = tpu.matmul %0, %1, %cst {dimension_numbers = #tpu.dot_dimension_numbers<[1], [0], [0], [1], [0, 0, 1, 1], [], []>} : vector<16x16xbf16>, vector<16x32xbf16>, vector<16x32xf32> -> vector<16x32xf32>
    %c0_3 = arith.constant 0 : index
    %c0_4 = arith.constant 0 : index
    %3 = vector.load %arg3[%c0_3, %c0_4] : memref<1x32xf32, #tpu.memory_space<vmem>>, vector<1x32xf32>
    %4 = vector.broadcast %3 : vector<1x32xf32> to vector<16x32xf32>
    %5 = arith.addf %2, %4 : vector<16x32xf32>
    %cst_5 = arith.constant 0.000000e+00 : f32
    %6 = vector.broadcast %cst_5 : f32 to vector<16x32xf32>
    %7 = arith.maximumf %5, %6 : vector<16x32xf32>
    %8 = vector.shape_cast %7 : vector<16x32xf32> to vector<2x8x32xf32>
    %c0_6 = arith.constant 0 : index
    %c0_7 = arith.constant 0 : index
    %9 = vector.load %arg4[%c0_6, %c0_7] : memref<1x32xf32, #tpu.memory_space<vmem>>, vector<1x32xf32>
    %10 = vector.shape_cast %9 : vector<1x32xf32> to vector<1x1x32xf32>
    %11 = vector.broadcast %10 : vector<1x1x32xf32> to vector<2x8x32xf32>
    %12 = arith.mulf %8, %11 : vector<2x8x32xf32>
    %cst_8 = arith.constant dense<0.000000e+00> : vector<2x8xf32>
    %13 = vector.multi_reduction <add>, %12, %cst_8 [2] : vector<2x8x32xf32> to vector<2x8xf32>
    %c0_9 = arith.constant 0 : index
    %c0_10 = arith.constant 0 : index
    %14 = vector.load %arg5[%c0_9, %c0_10] : memref<1x1xf32, #tpu.memory_space<vmem>>, vector<1x1xf32>
    %15 = vector.broadcast %14 : vector<1x1xf32> to vector<2x8xf32>
    %16 = arith.addf %13, %15 : vector<2x8xf32>
    %c0_11 = arith.constant 0 : index
    %c0_12 = arith.constant 0 : index
    %17 = vector.load %arg6[%c0_11, %c0_12] : memref<2x8xf32, #tpu.memory_space<vmem>>, vector<2x8xf32>
    %cst_13 = arith.constant 1.000000e+00 : f32
    %18 = vector.broadcast %cst_13 : f32 to vector<2x8xf32>
    %19 = arith.cmpf oeq, %17, %18 : vector<2x8xf32>
    %cst_14 = arith.constant 0xFF800000 : f32
    %20 = vector.broadcast %cst_14 : f32 to vector<2x8xf32>
    %21 = arith.select %19, %16, %20 : vector<2x8xi1>, vector<2x8xf32>
    %cst_15 = arith.constant dense<0xFF800000> : vector<2xf32>
    %22 = vector.multi_reduction <maximumf>, %21, %cst_15 [1] : vector<2x8xf32> to vector<2xf32>
    %23 = vector.shape_cast %22 : vector<2xf32> to vector<2x1xf32>
    %24 = vector.broadcast %23 : vector<2x1xf32> to vector<2x8xf32>
    %25 = arith.subf %21, %24 : vector<2x8xf32>
    %26 = math.exp %25 : vector<2x8xf32>
    %cst_16 = arith.constant dense<0.000000e+00> : vector<2xf32>
    %27 = vector.multi_reduction <add>, %26, %cst_16 [1] : vector<2x8xf32> to vector<2xf32>
    %28 = vector.shape_cast %27 : vector<2xf32> to vector<2x1xf32>
    %29 = math.log %28 : vector<2x1xf32>
    %30 = vector.broadcast %29 : vector<2x1xf32> to vector<2x8xf32>
    %31 = arith.subf %25, %30 : vector<2x8xf32>
    %c0_17 = arith.constant 0 : index
    %c0_18 = arith.constant 0 : index
    %32 = vector.load %arg7[%c0_17, %c0_18] : memref<2x8xf32, #tpu.memory_space<vmem>>, vector<2x8xf32>
    tpu.vector_store %arg7[%c0_17, %c0_18], %31 {strides = array<i32>} : memref<2x8xf32, #tpu.memory_space<vmem>>, vector<2x8xf32>,
    return
  }
  func.func @transform_0(%arg0: i32) -> (i32, i32) {
    %c0_i32 = arith.constant 0 : i32
    %c0_i32_0 = arith.constant 0 : i32
    return %arg0, %c0_i32 : i32, i32
  }
  func.func @transform_1(%arg0: i32) -> (i32, i32) {
    %c0_i32 = arith.constant 0 : i32
    %c0_i32_0 = arith.constant 0 : i32
    %c0_i32_1 = arith.constant 0 : i32
    return %c0_i32, %c0_i32_0 : i32, i32
  }
  func.func @transform_2(%arg0: i32) -> (i32, i32) {
    %c0_i32 = arith.constant 0 : i32
    %c0_i32_0 = arith.constant 0 : i32
    %c0_i32_1 = arith.constant 0 : i32
    return %c0_i32, %c0_i32_0 : i32, i32
  }
  func.func @transform_3(%arg0: i32) -> (i32, i32) {
    %c0_i32 = arith.constant 0 : i32
    %c0_i32_0 = arith.constant 0 : i32
    %c0_i32_1 = arith.constant 0 : i32
    return %c0_i32, %c0_i32_0 : i32, i32
  }
  func.func @transform_4(%arg0: i32) -> (i32, i32) {
    %c0_i32 = arith.constant 0 : i32
    %c0_i32_0 = arith.constant 0 : i32
    %c0_i32_1 = arith.constant 0 : i32
    return %c0_i32, %c0_i32_0 : i32, i32
  }
  func.func @transform_5(%arg0: i32) -> (i32, i32) {
    %c0_i32 = arith.constant 0 : i32
    %c0_i32_0 = arith.constant 0 : i32
    return %arg0, %c0_i32 : i32, i32
  }
  func.func @transform_6(%arg0: i32) -> (i32, i32) {
    %c0_i32 = arith.constant 0 : i32
    %c0_i32_0 = arith.constant 0 : i32
    return %arg0, %c0_i32 : i32, i32
  }
}

</mosaic_0001>

<bundles_post_ra>
// kernel: tpu_custom_call.1
= control target key start
LH: loop header
LB: loop body
LE: loop exit
PB: predicated region body
PF: predicated region fallthrough
CT: control target
= control target key end

     0   :  { %s363_s0 = inlined_call_operand.hbm [shape: bf16[16,16], index: 0, kind: input, shape index: {}]   ;;  %s364_s1 = inlined_call_operand.hbm [shape: bf16[16,32], index: 1, kind: input, shape index: {}]   ;;  %s365_s2 = inlined_call_operand.vmem [shape: f32[1,32], index: 2, kind: input, shape index: {}]   ;;  %s366_s3 = inlined_call_operand.vmem [shape: f32[1,32], index: 3, kind: input, shape index: {}]   ;;  %s367_s4 = inlined_call_operand.<no memory space> [shape: f32[1,1], index: 4, kind: input, shape index: {}]   ;;  %s368_s5 = inlined_call_operand.vmem [shape: f32[2,8], index: 5, kind: input, shape index: {}]   ;;  %s369_s6 = inlined_call_operand.hbm [shape: f32[2,8], index: 6, kind: output, shape index: {}]  }
   0x1   :  { %v11_v0 = vstv %s367_s4 }
   0x2   :  { %12 = vst [vmem:[#allocation2] sm:$0x1] %v11_v0 }
   0x3   :  { %13 = vsyncpa [#allocation4], 0 }
   0x4   :  { %14 = vsyncpa [#allocation7], 0 }
   0x5   :  { %15 = vsyncpa [#allocation5], 0  ;;  %s296_s23 = smov [#allocation3]  }
   0x6   :  { %s21_s24 = sshll.u32 %s296_s23, 4  ;;  %s22_s24 = int_to_ptr.vmem [resolvable:$true] %s21_s24 }
   0x7   :  { %s238_s25 = scalar_lea.vmem %s22_s24, 128  ;;  %p243_p1 = scmp.lt.s32.totalorder %s22_s24, %s22_s24 }
   0x8   :  { %p239_p0 = scmp.ne.s32.totalorder %s22_s24, %s238_s25  ;;  %p244_p2 = scmp.lt.s32.totalorder %s238_s25, %s238_s25 }
   0xa   :  { %p245_p3 = por %p244_p2, %p243_p1 }
   0xc   :  { %p246_p4 = pnand %p245_p3, %p239_p0 }
   0xe   :  { %249 = shalt.err (!%p246_p4)
}
   0xf   :  { %s297_s26 = smov 64   ;;  %s298_s27 = smov 4  }
  0x10   :  { %27 = dma.hbm_to_vmem [thread:$0]  %s363_s0, 128, %s22_s24, [#allocation4], %s297_s26, %s297_s26, %s298_s27  }
  0x11   :  { %s299_s4 = smov [#allocation6]  }
  0x12   :  { %s33_s30 = sshll.u32 %s299_s4, 4  ;;  %s34_s30 = int_to_ptr.vmem [resolvable:$true] %s33_s30 }
  0x13   :  { %s258_s7 = scalar_lea.vmem %s34_s30, 128  ;;  %p263_p6 = scmp.lt.s32.totalorder %s34_s30, %s34_s30 }
  0x14   :  { %p259_p5 = scmp.ne.s32.totalorder %s34_s30, %s258_s7  ;;  %p264_p7 = scmp.lt.s32.totalorder %s258_s7, %s258_s7 }
  0x16   :  { %p265_p8 = por %p264_p7, %p263_p6 }
  0x18   :  { %p266_p9 = pnand %p265_p8, %p259_p5 }
  0x1a   :  { %269 = shalt.err (!%p266_p9)
}
  0x1b   :  { %39 = dma.hbm_to_vmem [thread:$0]  %s364_s1, 128, %s34_s30, [#allocation7], %s297_s26, %s297_s26, %s298_s27  }
  0x1c   :  { %290 = dma.done.wait [#allocation4], 128  }
  0x1d   :  { %291 = vsyncadd [#allocation4], 4294967168 }
  0x1e   :  { %292 = dma.done.wait [#allocation7], 128  }
  0x1f   :  { %293 = vsyncadd [#allocation7], 4294967168  ;;  %v300_v1 = vmov 0.0   ;;  %vm301_vm0 = vmmov 0   ;;  %v224_v2 = vld [vmem:[#allocation6] sm:$0xff]   ;;  %v225_v3 = vld [vmem:[#allocation3] sm:$0xff]   ;;  %v156_v20 = vlaneseq }
  0x20   :  { %208 = vmatprep.subr.bf16.mxu0 %v300_v1  ;;  %210 = vmatprep.mubr.msk.bf16.mxu0 %vm301_vm0, %v300_v1  ;;  %vm77_vm1 = vcmask 130048   ;;  %v205_v4 = vld [vmem:[#allocation2] ss:$0 sm:$0xff]  ;;  %v302_v5 = vmov 0   ;;  %vm133_vm2 = vcmask 261120   ;;  %vm166_vm3 = vcmask 1041409  }
  0x21   :  { %209 = vmatpush3.bf16.msra.mxu0 %v224_v2  ;;  %222 = vset.pattern.permute.xlu1 %v302_v5  ;;  %v200_v6 = vld [vmem:[%s365_s2] ss:$0 sm:$0xff]  ;;  %v157_v21 = vand.u32 127, %v156_v20  ;;  %v159_v22 = vshrl.u32 %v156_v20, 7  ;;  %vm170_vm5 = vcmask 58368  }
  0x22   :  { %223 = vset.pattern.permute.xlu0 %v302_v5  ;;  %147 = vperm.xlu1 %222, %v205_v4   ;;  %v204_v10 = vld [vmem:[%s366_s3] ss:$0 sm:$0xff] }
  0x23   :  { %v160_v25 = vsub.s32 %v157_v21, %v159_v22  ;;  %v152_v28 = vld [vmem:[%s368_s5] sm:$0x3]  ;;  %s303_s5 = smov [#allocation8]  }
  0x24   :  { %211 = vmatmul.mubr.msk.bf16.vlgmr.msra.gmra.mxu0 %vm77_vm1, %v225_v3  ;;  %vm153_vm4 = vcmp.eq.f32.partialorder %v152_v28, 1.0  ;;  %s190_s12 = sshll.u32 %s303_s5, 4  ;;  %s191_s12 = int_to_ptr.vmem [resolvable:$true] %s190_s12 }
  0x25   :  { %s270_s13 = scalar_lea.vmem %s191_s12, 32  ;;  %p275_p11 = scmp.lt.s32.totalorder %s191_s12, %s191_s12 }
  0x26   :  { %p271_p10 = scmp.ne.s32.totalorder %s191_s12, %s270_s13  ;;  %p276_p12 = scmp.lt.s32.totalorder %s270_s13, %s270_s13 }
  0x28   :  { %p277_p13 = por %p276_p12, %p275_p11 }
  0x2a   :  { %p278_p0 = pnand %p277_p13, %p271_p10 }
  0x9d   :  { %v148_v23 = vpop.permute.xlu1 %147 }
  0xe4   :  { %v115_v7 = vpop.f32.mrf.mxu0 }
  0xe5   :  { %v116_v8 = vadd.f32 %v200_v6, %v115_v7 }
  0xe6   :  { %v212_v9 = vpop.f32.mrf.mxu0 }
  0xe7   :  { %v122_v11 = vmax.f32 %v116_v8, 0.0 }
  0xe8   :  { %v118_v12 = vpop.f32.mrf.mxu0 }
  0xe9   :  { %v119_v13 = vadd.f32 %v200_v6, %v118_v12  ;;  %v131_v14 = vmul.f32 %v204_v10, %v122_v11 }
  0xea   :  { %v213_v15 = vpop.f32.mrf.mxu0 }
  0xeb   :  { %v123_v16 = vmax.f32 %v119_v13, 0.0  ;;  %v134_v17 = vsel %vm133_vm2, %v131_v14, 0.0 }
  0xec   :  { %135 = vadd.xlane.f32.xlu0 %v134_v17 }
  0xed   :  { %v132_v18 = vmul.f32 %v204_v10, %v123_v16 }
  0xef   :  { %v137_v19 = vsel %vm133_vm2, %v132_v18, 0.0 }
  0xf0   :  { %138 = vadd.xlane.f32.xlu0 %v137_v19 }
 0x175   :  { %v136_v24 = vpop.xlane.xlu0 %135 }
 0x176   :  { %v150_v26 = vadd.f32 %v148_v23, %v136_v24 }
 0x178   :  { %v161_v30 = vrot.slane %v150_v26, %v160_v25 }
 0x179   :  { %v139_v27 = vpop.xlane.xlu0 %138 }
 0x17a   :  { %v151_v29 = vadd.f32 %v148_v23, %v139_v27 }
 0x17c   :  { %v165_v31 = vrot.slane %v151_v29, %v160_v25 }
 0x17e   :  { %v167_v32 = vsel %vm166_vm3, %v165_v31, %v161_v30 }
 0x17f   :  { %v169_v33 = vsel %vm153_vm4, %v167_v32, -inf }
 0x180   :  { %v171_v34 = vsel %vm170_vm5, %v169_v33, -inf }
 0x181   :  { %172 = vmax.xlane.f32.xlu1 %v171_v34 }
 0x20a   :  { %v173_v35 = vpop.xlane.xlu1 %172 }
 0x20b   :  { %v174_v36 = vsub.f32 %v169_v33, %v173_v35 }
 0x20d   :  { %v175_v37 = vmul.f32 1.442695, %v174_v36 }
 0x20f   :  { %226 = vpow2.f32 %v175_v37 }
 0x21c   :  { %v227_v38 = vpop.eup %226 }
 0x21d   :  { %v177_v39 = vsel %vm170_vm5, %v227_v38, 0.0 }
 0x21e   :  { %178 = vadd.xlane.f32.xlu0 %v177_v39 }
 0x2a7   :  { %v179_v40 = vpop.xlane.xlu0 %178 }
 0x2a8   :  { %228 = vlog2.f32 %v179_v40 }
 0x2b5   :  { %v229_v41 = vpop.eup %228 }
 0x2b6   :  { %v181_v42 = vmul.f32 0.6931472, %v229_v41 }
 0x2b8   :  { %v182_v43 = vsub.f32 %v174_v36, %v181_v42 }
 0x2ba   :  { %183 = vst.msk [vmem:[#allocation8] sm:$0x3] %vm170_vm5, %v182_v43 }
 0x2bb   :  { %281 = shalt.err (!%p278_p0)
}
 0x2bc   :  { %193 = dma.vmem_to_hbm [thread:$0]  %s191_s12, 32, %s369_s6, [#allocation5]  }
 0x2bd   :  { %294 = dma.done.wait [#allocation5], 32  }
 0x2be   :  { %295 = vsyncadd [#allocation5], 4294967264 }
 0x2bf   :  { %197 = vsyncpa [#allocation4], 1 }
 0x2c0   :  { %198 = vsyncpa [#allocation7], 1 }
 0x2c1   :  { %199 = vsyncpa [#allocation5], 1 }

</bundles_post_ra>
